<compile_context>
chip_gen: v5e
topology: v5e:2x2
jax: 0.10.0
libtpu: 0.0.40
codegen_flags: <defaults>
</compile_context>

<pallas_src>
import math

import jax
import jax.numpy as jnp
from jax.experimental import pallas as pl
from jax.experimental.pallas import tpu as pltpu

_LANE = 128          # lane (last-dim) granularity of VMEM tiles
_SUBLANE_PACK = 16   # sublane multiple safe for both f32 (8) and bf16 (16)


def _round_up(x, m):
    return ((x + m - 1) // m) * m


# ---------------------------------------------------------------------------
# Pallas kernel: tiled (im2col) matmul + bias  ->  the conv hot path
# ---------------------------------------------------------------------------
def _make_conv_kernel(k, k_pad):
    """Matmul+bias kernel; zero-extends the patch tile to k_pad inside VMEM."""
    if k == k_pad:
        def kernel(p_ref, w_ref, b_ref, o_ref):
            acc = jnp.dot(p_ref[...], w_ref[...], preferred_element_type=jnp.float32)
            o_ref[...] = (acc + b_ref[...]).astype(o_ref.dtype)
        return kernel, False

    def kernel(p_ref, w_ref, b_ref, o_ref, pk_ref):
        # p_ref : (TM, K)        unpadded patch tile   (compute dtype)
        # w_ref : (K_pad, O_pad) zero-padded weights   (compute dtype)
        # b_ref : (1,  O_pad)    f32 bias
        # o_ref : (TM, O_pad)    f32, lane-dense output tile
        # pk_ref: (TM, K_pad)    VMEM scratch: K zero-extension keeps dot aligned
        # Rewritten fully every step (no cross-iteration state) so the grid axis
        # is safe to shard across TensorCores ("parallel").
        pk_ref[...] = jnp.zeros_like(pk_ref)
        pk_ref[:, :k] = p_ref[...]
        acc = jnp.dot(pk_ref[...], w_ref[...], preferred_element_type=jnp.float32)
        o_ref[...] = (acc + b_ref[...]).astype(o_ref.dtype)
    return kernel, True


# ---------------------------------------------------------------------------
# Host-side im2col, (C, kh, kw) flatten order (matches filt.reshape(O, C*KH*KW)).
# The reference's -1 row shift (with Python wraparound) is folded into the row
# indices, so no jnp.roll pass over the input is needed.
# ---------------------------------------------------------------------------
def _im2col(x, kh, kw, sh, sw, row_shift=-1):
    """x: (N, C, H, W) -> (N*h_out*w_out, C*kh*kw); H index = (sh*y + i + row_shift) mod H."""
    N, C, H, W = x.shape
    h_out = (H - kh) // sh + 1
    w_out = (W - kw) // sw + 1
    base_rows = jnp.arange(h_out) * sh
    cols = []
    for i in range(kh):
        rows = (base_rows + i + row_shift) % H          # -1 wraps to H-1, like the reference
        x_rows = x[:, :, rows, :]                       # (N, C, h_out, W)
        for j in range(kw):
            cols.append(x_rows[:, :, :, j: j + sw * (w_out - 1) + 1: sw])  # (N, C, h_out, w_out)
    cols = jnp.stack(cols, axis=0).reshape(kh, kw, N, C, h_out, w_out)
    cols = cols.transpose(2, 4, 5, 3, 0, 1)             # (N, h_out, w_out, C, kh, kw)
    return cols.reshape(N * h_out * w_out, C * kh * kw), h_out, w_out


def _tile_vmem_bytes(tm, k, k_pad, o_pad, cdt_bytes):
    """Approximate per-core VMEM footprint of one pipelined grid step."""
    k_lanes = _round_up(k, _LANE)               # lane padding of the patch block in VMEM
    patch = 2 * tm * k_lanes * cdt_bytes        # double-buffered patch tile
    outb = 2 * tm * o_pad * 4                   # double-buffered f32 output tile
    scr = tm * k_pad * cdt_bytes                # K zero-extension scratch (single)
    wgt = 2 * k_pad * o_pad * cdt_bytes         # resident weight slab (default 2 buffers)
    bias = 2 * 8 * o_pad * 4
    return patch + outb + scr + wgt + bias


def conv2d_pallas(x, filt, bias, stride, *,
                  compute_dtype=jnp.bfloat16, channels_last_out=False):
    """Naive-Conv2d forward (including its -1 row-shift quirk) via a Pallas matmul.

    compute_dtype: dtype of the patch/weight HBM streams and MXU operands
      (accumulation is always f32, bias is f32).  bfloat16 (default) halves HBM
      traffic and uses the bf16 MXU; float32 reproduces module numerics ~1e-4.
    channels_last_out: return (N, Hout, Wout, O), skipping the final NCHW
      transpose, for chained NHWC consumers.  Default False == module layout.
    """
    N, C, H, W = x.shape
    O, Ci, KH, KW = filt.shape
    assert Ci == C, "channel mismatch"
    SH, SW = stride
    h_out = (H - KH) // SH + 1
    w_out = (W - KW) // SW + 1
    # The PyTorch reference is only self-consistent for the square case.
    assert h_out == w_out and KH == KW and SH == SW, \
        "reference forward is only well-defined for the square case"

    cdt = jnp.dtype(compute_dtype)

    # im2col in the compute dtype (the patch matrix is the dominant HBM stream).
    patches, h_out, w_out = _im2col(x.astype(compute_dtype), KH, KW, SH, SW)   # (M, K)
    M, K = patches.shape
    K_pad = _round_up(K, _LANE)
    O_pad = _round_up(O, _LANE)

    # VMEM budget: ~3/4 of physical VMEM (=> ~96 MiB on v5e/v6e, ~48 MiB on v7x).
    try:
        vmem_cap = int(pltpu.get_tpu_info().vmem_capacity_bytes)
    except Exception:
        vmem_cap = 64 * 1024 * 1024
    budget = min((vmem_cap * 3) // 4, 96 * 1024 * 1024)

    # Balanced row tiles: >= 2 grid steps (v7x has 2 TensorCores), 512-1024 rows
    # per tile depending on VMEM headroom, last tile no longer up to ~2x padded.
    tm_target = 1024 if budget >= (64 << 20) else 512
    n_tiles = max(2, pl.cdiv(M, tm_target))
    TM = _round_up(pl.cdiv(M, n_tiles), _SUBLANE_PACK)
    while TM > _SUBLANE_PACK and _tile_vmem_bytes(TM, K, K_pad, O_pad, cdt.itemsize) > budget:
        TM = _round_up(TM // 2, _SUBLANE_PACK)
    M_pad = _round_up(M, TM)

    footprint = _tile_vmem_bytes(TM, K, K_pad, O_pad, cdt.itemsize)
    vmem_limit = int(max(32 << 20, min(budget, 2 * footprint + (8 << 20))))

    # Row-pad only (fuses into the im2col fusion); K stays UNpadded in HBM.
    patches_p = jnp.pad(patches, ((0, M_pad - M), (0, 0)))                  # (M_pad, K)
    w2d = jnp.pad(filt.astype(compute_dtype).reshape(O, K).T,
                  ((0, K_pad - K), (0, O_pad - O)))                         # (K_pad, O_pad)
    b2d = jnp.pad(bias.reshape(1, O).astype(jnp.float32),
                  ((0, 0), (0, O_pad - O)))                                 # (1, O_pad)

    kernel, needs_scratch = _make_conv_kernel(K, K_pad)
    scratch = [pltpu.VMEM((TM, K_pad), compute_dtype)] if needs_scratch else []

    cost = pl.CostEstimate(
        flops=2 * M_pad * K_pad * O_pad,
        transcendentals=0,
        bytes_accessed=(M_pad * K + K_pad * O_pad) * cdt.itemsize
                       + O_pad * 4 + M_pad * O_pad * 4,
    )

    out_flat = pl.pallas_call(
        kernel,
        out_shape=jax.ShapeDtypeStruct((M_pad, O_pad), jnp.float32),
        grid_spec=pltpu.PrefetchScalarGridSpec(
            num_scalar_prefetch=0,
            grid=(M_pad // TM,),
            in_specs=[
                pl.BlockSpec((TM, K), lambda i: (i, 0)),        # patch tile (full-K block)
                pl.BlockSpec((K_pad, O_pad), lambda i: (0, 0)), # resident weight slab
                pl.BlockSpec((1, O_pad), lambda i: (0, 0)),     # bias
            ],
            out_specs=pl.BlockSpec((TM, O_pad), lambda i: (i, 0)),  # lane-dense output
            scratch_shapes=scratch,
        ),
        compiler_params=pltpu.CompilerParams(
            dimension_semantics=("parallel",),   # M tiles shard across v7x's 2 TCs
            vmem_limit_bytes=vmem_limit,
        ),
        cost_estimate=cost,
    )(patches_p, w2d, b2d)

    # Drop padded rows/channels; reshape to the module's output.
    out = out_flat[:M, :O].reshape(N, h_out, w_out, O)
    if channels_last_out:
        return out
    return out.transpose(0, 3, 1, 2)   # NCHW, as the module returns


# ---------------------------------------------------------------------------
# Main: deterministic params (same init scheme as the module), small shapes
# ---------------------------------------------------------------------------
if __name__ == "__main__":
    key = jax.random.PRNGKey(0)
    N, C, H, W = 2, 4, 16, 16
    O, KH, KW = 8, 3, 3
    SH, SW = 1, 1
    BOUND = 5.0

    k_x, k_w, k_b = jax.random.split(key, 3)
    x = jax.random.normal(k_x, (N, C, H, W), dtype=jnp.float32)

    # kaiming_uniform_(a=sqrt(5)) -> U(-1/sqrt(fan_in), 1/sqrt(fan_in)), fan_in = C*KH*KW
    fan_in = C * KH * KW
    w_bound = 1.0 / math.sqrt(fan_in)
    filt = jax.random.uniform(k_w, (O, C, KH, KW), jnp.float32, -w_bound, w_bound)
    # bias: uniform_(-bound, bound) with bound=5
    bias = jax.random.uniform(k_b, (O,), jnp.float32, -BOUND, BOUND)

    # Pure-JAX reference of the module's (quirky) semantics.
    ref = jax.lax.conv_general_dilated(
        jnp.roll(x, 1, axis=2), filt, (SH, SW), "VALID",
        dimension_numbers=("NCHW", "OIHW", "NCHW")) + bias[None, :, None, None]

    # f32 path: reproduces the module's numerics.
    out_f32 = jax.block_until_ready(
        conv2d_pallas(x, filt, bias, (SH, SW), compute_dtype=jnp.float32))
    assert out_f32.shape == (N, O, (H - KH) // SH + 1, (W - KW) // SW + 1)
    assert jnp.allclose(out_f32, ref, atol=1e-4, rtol=1e-4)

    # Default bf16 path: half the HBM bytes on the dominant stream, bf16 MXU.
    out_bf16 = jax.block_until_ready(conv2d_pallas(x, filt, bias, (SH, SW)))
    assert out_bf16.shape == ref.shape
    assert jnp.allclose(out_bf16, ref, atol=5e-2, rtol=5e-2)

    print("KERNEL_OK")
</pallas_src>

<mosaic_0001>
module attributes {stable_mosaic.version = 11 : i64} {
  func.func @kernel(%arg0: i32, %arg1: memref<208x36xf32, #tpu.memory_space<vmem>>, %arg2: memref<128x128xf32, #tpu.memory_space<vmem>>, %arg3: memref<1x128xf32, #tpu.memory_space<vmem>>, %arg4: memref<208x128xf32, #tpu.memory_space<vmem>>, %arg5: memref<208x128xf32, #tpu.memory_space<vmem>>) attributes {dimension_semantics = [#tpu.dimension_semantics<parallel>], iteration_bounds = array<i64: 2>, scalar_prefetch = 0 : i64, scratch_operands = 1 : i64, tpu.core_type = #tpu.core_type<tc>, window_params = [{transform_indices = @transform_0, window_bounds = array<i64: 208, 36>}, {pipeline_mode = #tpu.pipeline_mode<synchronous>, transform_indices = @transform_1, window_bounds = array<i64: 128, 128>}, {pipeline_mode = #tpu.pipeline_mode<synchronous>, transform_indices = @transform_2, window_bounds = array<i64: 1, 128>}, {transform_indices = @transform_3, window_bounds = array<i64: 208, 128>}]} {
    %cst = arith.constant 0.000000e+00 : f32
    %0 = vector.broadcast %cst : f32 to vector<208x128xf32>
    %c0 = arith.constant 0 : index
    %c0_0 = arith.constant 0 : index
    %1 = vector.load %arg5[%c0, %c0_0] : memref<208x128xf32, #tpu.memory_space<vmem>>, vector<208x128xf32>
    tpu.vector_store %arg5[%c0, %c0_0], %0 {strides = array<i32>} : memref<208x128xf32, #tpu.memory_space<vmem>>, vector<208x128xf32>,
    %c0_1 = arith.constant 0 : index
    %c0_2 = arith.constant 0 : index
    %2 = vector.load %arg1[%c0_1, %c0_2] : memref<208x36xf32, #tpu.memory_space<vmem>>, vector<208x36xf32>
    %c0_3 = arith.constant 0 : index
    %c0_4 = arith.constant 0 : index
    %3 = vector.load %arg5[%c0_3, %c0_4] : memref<208x128xf32, #tpu.memory_space<vmem>>, vector<208x36xf32>
    tpu.vector_store %arg5[%c0_3, %c0_4], %2 {strides = array<i32>} : memref<208x128xf32, #tpu.memory_space<vmem>>, vector<208x36xf32>,
    %c0_5 = arith.constant 0 : index
    %c0_6 = arith.constant 0 : index
    %4 = vector.load %arg5[%c0_5, %c0_6] : memref<208x128xf32, #tpu.memory_space<vmem>>, vector<208x128xf32>
    %c0_7 = arith.constant 0 : index
    %c0_8 = arith.constant 0 : index
    %5 = vector.load %arg2[%c0_7, %c0_8] : memref<128x128xf32, #tpu.memory_space<vmem>>, vector<128x128xf32>
    %cst_9 = arith.constant dense<0.000000e+00> : vector<208x128xf32>
    %6 = tpu.matmul %4, %5, %cst_9 {dimension_numbers = #tpu.dot_dimension_numbers<[1], [0], [0], [1], [0, 0, 1, 1], [], []>} : vector<208x128xf32>, vector<128x128xf32>, vector<208x128xf32> -> vector<208x128xf32>
    %c0_10 = arith.constant 0 : index
    %c0_11 = arith.constant 0 : index
    %7 = vector.load %arg3[%c0_10, %c0_11] : memref<1x128xf32, #tpu.memory_space<vmem>>, vector<1x128xf32>
    %8 = vector.broadcast %7 : vector<1x128xf32> to vector<208x128xf32>
    %9 = arith.addf %6, %8 : vector<208x128xf32>
    %c0_12 = arith.constant 0 : index
    %c0_13 = arith.constant 0 : index
    %10 = vector.load %arg4[%c0_12, %c0_13] : memref<208x128xf32, #tpu.memory_space<vmem>>, vector<208x128xf32>
    tpu.vector_store %arg4[%c0_12, %c0_13], %9 {strides = array<i32>} : memref<208x128xf32, #tpu.memory_space<vmem>>, vector<208x128xf32>,
    return
  }
  func.func @transform_0(%arg0: i32) -> (i32, i32) {
    %c0_i32 = arith.constant 0 : i32
    %c0_i32_0 = arith.constant 0 : i32
    return %arg0, %c0_i32 : i32, i32
  }
  func.func @transform_1(%arg0: i32) -> (i32, i32) {
    %c0_i32 = arith.constant 0 : i32
    %c0_i32_0 = arith.constant 0 : i32
    %c0_i32_1 = arith.constant 0 : i32
    return %c0_i32, %c0_i32_0 : i32, i32
  }
  func.func @transform_2(%arg0: i32) -> (i32, i32) {
    %c0_i32 = arith.constant 0 : i32
    %c0_i32_0 = arith.constant 0 : i32
    %c0_i32_1 = arith.constant 0 : i32
    return %c0_i32, %c0_i32_0 : i32, i32
  }
  func.func @transform_3(%arg0: i32) -> (i32, i32) {
    %c0_i32 = arith.constant 0 : i32
    %c0_i32_0 = arith.constant 0 : i32
    return %arg0, %c0_i32 : i32, i32
  }
}

</mosaic_0001>

<bundles_post_ra>
// kernel: tpu_custom_call.1
= control target key start
LH: loop header
LB: loop body
LE: loop exit
PB: predicated region body
PF: predicated region fallthrough
CT: control target
= control target key end

     0   :  { %8 = vsyncpa [#allocation4], 0  ;;  %s960_s0 = inlined_call_operand.vmem [shape: f32[416,36], index: 0, kind: input, shape index: {}]   ;;  %s961_s1 = inlined_call_operand.vmem [shape: f32[128,128], index: 1, kind: input, shape index: {}]   ;;  %s962_s2 = inlined_call_operand.vmem [shape: f32[1,128], index: 2, kind: input, shape index: {}]   ;;  %s963_s3 = inlined_call_operand.hbm [shape: f32[416,128], index: 3, kind: output, shape index: {}]  }
   0x1   :  { %10 = vsyncpa [#allocation4 + $0x1], 0  ;;  %s684_s12 = smov 0   ;;  %s686_s13 = smov 0  }
   0x2   :  { %s688_s14 = smov 0   ;;  %s690_s15 = smov 0  }
   0x3 LB: > { %s705_s16 = sadd.s32 4294967295, %s659_s15   ;;  %s496_s17 = sadd.s32 4294967294, %s659_s15   ;;  %s659_s15 = sphi %s690_s15, %s969_s15   ;;  %s655_s14 = sphi %s688_s14, %s968_s14   ;;  %s651_s13 = sphi %s686_s13, %s967_s13   ;;  %s647_s12 = sphi %s684_s12, %s966_s12  }
   0x4   : > { %s709_s18 = sadd.s32 1, %s659_s15   ;;  %s91_s19 = sadd.s32 1, %s655_s14 }
   0x5   : > { %s88_s20 = ssub.s32 %s659_s15, %s709_s18  ;;  %p101_p0 = scmp.ne.s32.totalorder %s655_s14, %s651_s13 }
   0x6   : > { %p89_p1 = scmp.eq.s32.totalorder %s88_s20, 0  ;;  %p102_p2 = scmp.eq.s32.totalorder %s705_s16, 1 }
   0x7   : > { %p107_p3 = scmp.ne.s32.totalorder %s651_s13, %s647_s12  ;;  %p108_p4 = scmp.eq.s32.totalorder %s496_s17, 1 }
   0x8   : > { %s720_s21 = scalar_select %p89_p1, %s655_s14, %s91_s19  }
   0x9   : > { %p722_p5 = por %p102_p2, %p101_p0  ;;  %p726_p6 = por %p108_p4, %p107_p3 }
   0xa   : > { %p499_p7 = scmp.ge.s32.totalorder %s659_s15, 1  ;;  %p141_p8 = scmp.lt.s32.totalorder %s659_s15, 3 }
   0xc   : > { %p142_p9 = pnand %p499_p7, %p141_p8 }
   0xd   : > { %s165_s28 = smul.u32 (!%p142_p9), 26, %s705_s16  ;;  %s617_s20 = scalar_lea.hbm (!%p142_p9), %s963_s3, 416 }
   0xe   : > { %145 = sbr.rel (%p142_p9) target bundleno = 241 (0xf1), region = 32 }
   0xf   : > { %p166_p10 = scmp.lt.s32.totalorder (!%p142_p9), %s165_s28, 51  ;;  %s504_s30 = smul.u32 (!%p142_p9), 208, %s705_s16 }
  0x11   : > { %s430_s6 = scalar_lea.hbm (!%p142_p9), %s963_s3, %s504_s30 }
  0x12   : > { %s433_s7 = sshll.u32 (!%p142_p9), %s430_s6, 4  ;;  %s434_s7 = int_to_ptr.hbm [resolvable:$true] %s433_s7 }
  0x13   : > { %v292_v0 = vld [vmem:[%s961_s1 + $0x78] sm:$0xff]  ;;  %v291_v1 = vld [vmem:[%s961_s1 + $0x70] sm:$0xff]  ;;  %v661_v2 = vmov 0.0   ;;  %v290_v3 = vld [vmem:[%s961_s1 + $0x68] sm:$0xff]  ;;  %s971_s28 = smov (!%p166_p10, %s165_s28), 51  ;;  %vm224_vm0 = vcmask 293888  }
  0x14   : > { %506 = vmatpush.msra.mxu2 %v292_v0  ;;  %507 = vmatpush.msra.mxu3 %v292_v0  ;;  %184 = vst [vmem:[#allocation2 + $0x60] sm:$0xff] %v661_v2  ;;  %v289_v4 = vld [vmem:[%s961_s1 + $0x60] sm:$0xff]  ;;  %v288_v5 = vld [vmem:[%s961_s1 + $0x58] sm:$0xff]  ;;  %s500_s8 = sshll.u32 %s971_s28, 3  ;;  %v287_v6 = vld [vmem:[%s961_s1 + $0x50] sm:$0xff]  ;;  %s611_s9 = sshra.s32 %s434_s7, 4  ;;  %s612_s9 = int_to_ptr.hbm [resolvable:$true] %s611_s9 }
  0x15   : > { %297 = vmatpush.msra.mxu0 %v292_v0  ;;  %505 = vmatpush.msra.mxu1 %v292_v0  ;;  %172 = vst [vmem:[#allocation2] sm:$0xff] %v661_v2  ;;  %s757_s11 = scalar_lea.vmem %s960_s0, %s500_s8  ;;  %v286_v8 = vld [vmem:[%s961_s1 + $0x48] sm:$0xff]  ;;  %v285_v9 = vld [vmem:[%s961_s1 + $0x40] sm:$0xff]  ;;  %v284_v10 = vld [vmem:[%s961_s1 + $0x38] sm:$0xff]  ;;  %s613_s10 = scalar_lea.hbm %s612_s9, 208 }
  0x16   : > { %509 = vmatpush.msra.mxu2 %v291_v1  ;;  %510 = vmatpush.msra.mxu3 %v291_v1  ;;  %173 = vst [vmem:[#allocation2 + $0x8] sm:$0xff] %v661_v2  ;;  %v210_v7 = vld [vmem:[%s757_s11 + $0x60] sm:$0xff]  ;;  %v283_v11 = vld [vmem:[%s961_s1 + $0x30] sm:$0xff]  ;;  %v282_v12 = vld [vmem:[%s961_s1 + $0x28] sm:$0xff]  ;;  %p614_p11 = scmp.ne.s32.totalorder %s612_s9, %s613_s10  ;;  %p618_p0 = scmp.lt.s32.totalorder %s612_s9, %s963_s3 }
  0x17   : > { %298 = vmatpush.msra.mxu0 %v291_v1  ;;  %508 = vmatpush.msra.mxu1 %v291_v1  ;;  %174 = vst [vmem:[#allocation2 + $0x10] sm:$0xff] %v661_v2  ;;  %v281_v13 = vld [vmem:[%s961_s1 + $0x20] sm:$0xff]  ;;  %v280_v14 = vld [vmem:[%s961_s1 + $0x18] sm:$0xff]  ;;  %v279_v15 = vld [vmem:[%s961_s1 + $0x10] sm:$0xff]  ;;  %p619_p1 = scmp.lt.s32.totalorder %s617_s20, %s613_s10 }
  0x18   : > { %512 = vmatpush.msra.mxu2 %v290_v3  ;;  %513 = vmatpush.msra.mxu3 %v290_v3  ;;  %175 = vst [vmem:[#allocation2 + $0x18] sm:$0xff] %v661_v2  ;;  %v217_v16 = vld [vmem:[%s757_s11 + $0x98] sm:$0xff]  ;;  %v278_v17 = vld [vmem:[%s961_s1 + $0x8] sm:$0xff]  ;;  %v218_v19 = vld [vmem:[%s757_s11 + $0xa0] sm:$0xff]  ;;  %p615_p12 = pnand %p614_p11, %p722_p5 }
  0x19   : > { %299 = vmatpush.msra.mxu0 %v290_v3  ;;  %511 = vmatpush.msra.mxu1 %v290_v3  ;;  %176 = vst [vmem:[#allocation2 + $0x20] sm:$0xff] %v661_v2  ;;  %v211_v18 = vld [vmem:[%s757_s11 + $0x68] sm:$0xff]  ;;  %v277_v20 = vld [vmem:[%s961_s1] sm:$0xff]  ;;  %v204_v23 = vld [vmem:[%s757_s11 + $0x30] sm:$0xff]  ;;  %p620_p2 = por %p619_p1, %p618_p0 }
  0x1a   : > { %515 = vmatpush.msra.mxu2 %v289_v4  ;;  %516 = vmatpush.msra.mxu3 %v289_v4  ;;  %177 = vst [vmem:[#allocation2 + $0x28] sm:$0xff] %v661_v2  ;;  %v198_v21 = vld [vmem:[%s757_s11] sm:$0xff]  ;;  %v212_v24 = vld [vmem:[%s757_s11 + $0x70] sm:$0xff]  ;;  %v219_v25 = vld [vmem:[%s757_s11 + $0xa8] sm:$0xff]  ;;  %p616_p13 = pneg %p615_p12 }
  0x1b   : > { %300 = vmatpush.msra.mxu0 %v289_v4  ;;  %514 = vmatpush.msra.mxu1 %v289_v4  ;;  %178 = vst [vmem:[#allocation2 + $0x30] sm:$0xff] %v661_v2  ;;  %v199_v26 = vld [vmem:[%s757_s11 + $0x8] sm:$0xff]  ;;  %v205_v27 = vld [vmem:[%s757_s11 + $0x38] sm:$0xff]  ;;  %v220_v30 = vld [vmem:[%s757_s11 + $0xb0] sm:$0xff] }
  0x1c   : > { %518 = vmatpush.msra.mxu2 %v288_v5  ;;  %519 = vmatpush.msra.mxu3 %v288_v5  ;;  %237 = vst.msk [vmem:[#allocation2 + $0x60] sm:$0xff] %vm224_vm0, %v210_v7  ;;  %v213_v28 = vld [vmem:[%s757_s11 + $0x78] sm:$0xff]  ;;  %v200_v31 = vld [vmem:[%s757_s11 + $0x10] sm:$0xff]  ;;  %v206_v33 = vld [vmem:[%s757_s11 + $0x40] sm:$0xff]  ;;  %p621_p3 = pnand %p620_p2, %p616_p13 }
  0x1d   : > { %301 = vmatpush.msra.mxu0 %v288_v5  ;;  %517 = vmatpush.msra.mxu1 %v288_v5  ;;  %179 = vst [vmem:[#allocation2 + $0x38] sm:$0xff] %v661_v2  ;;  %v214_v35 = vld [vmem:[%s757_s11 + $0x80] sm:$0xff]  ;;  %v221_v37 = vld [vmem:[%s757_s11 + $0xb8] sm:$0xff]  ;;  %v207_v40 = vld [vmem:[%s757_s11 + $0x48] sm:$0xff] }
  0x1e   : > { %521 = vmatpush.msra.mxu2 %v287_v6  ;;  %522 = vmatpush.msra.mxu3 %v287_v6  ;;  %180 = vst [vmem:[#allocation2 + $0x40] sm:$0xff] %v661_v2  ;;  %v201_v38 = vld [vmem:[%s757_s11 + $0x18] sm:$0xff]  ;;  %v215_v41 = vld [vmem:[%s757_s11 + $0x88] sm:$0xff]  ;;  %v222_v42 = vld [vmem:[%s757_s11 + $0xc0] sm:$0xff] }
  0x1f   : > { %302 = vmatpush.msra.mxu0 %v287_v6  ;;  %520 = vmatpush.msra.mxu1 %v287_v6  ;;  %181 = vst [vmem:[#allocation2 + $0x48] sm:$0xff] %v661_v2  ;;  %v202_v44 = vld [vmem:[%s757_s11 + $0x20] sm:$0xff]  ;;  %v208_v47 = vld [vmem:[%s757_s11 + $0x50] sm:$0xff]  ;;  %v223_v49 = vld [vmem:[%s757_s11 + $0xc8] sm:$0xff] }
  0x20   : > { %524 = vmatpush.msra.mxu2 %v286_v8  ;;  %525 = vmatpush.msra.mxu3 %v286_v8  ;;  %182 = vst [vmem:[#allocation2 + $0x50] sm:$0xff] %v661_v2  ;;  %v216_v48 = vld [vmem:[%s757_s11 + $0x90] sm:$0xff]  ;;  %v203_v51 = vld [vmem:[%s757_s11 + $0x28] sm:$0xff]  ;;  %v209_v52 = vld [vmem:[%s757_s11 + $0x58] sm:$0xff]  ;;  %s162_s11 = sand.u32 1, %s651_s13  }
  0x21   : > { %303 = vmatpush.msra.mxu0 %v286_v8  ;;  %523 = vmatpush.msra.mxu1 %v286_v8  ;;  %183 = vst [vmem:[#allocation2 + $0x58] sm:$0xff] %v661_v2  ;;  %s553_s26 = smul.u32 208, %s162_s11  ;;  %v870_v5 = vld [vmem:[%s962_s2] ss:$0 sm:$0xff]  ;;  %s419_s8 = scalar_lea.sflag [#allocation4], %s162_s11 }
  0x22   : > { %527 = vmatpush.msra.mxu2 %v285_v9  ;;  %528 = vmatpush.msra.mxu3 %v285_v9  ;;  %185 = vst [vmem:[#allocation2 + $0x68] sm:$0xff] %v661_v2 }
  0x23   : > { %304 = vmatpush.msra.mxu0 %v285_v9  ;;  %526 = vmatpush.msra.mxu1 %v285_v9  ;;  %186 = vst [vmem:[#allocation2 + $0x70] sm:$0xff] %v661_v2  ;;  %v263_v22 = vld [vmem:[#allocation2 + $0x60] sm:$0xff]  ;;  %s874_s29 = scalar_lea.vmem [#allocation3], %s553_s26 }
  0x24   : > { %530 = vmatpush.msra.mxu2 %v284_v10  ;;  %531 = vmatpush.msra.mxu3 %v284_v10  ;;  %187 = vst [vmem:[#allocation2 + $0x78] sm:$0xff] %v661_v2  ;;  %s431_s16 = sshll.u32 %s874_s29, 4  ;;  %s432_s16 = int_to_ptr.vmem [resolvable:$true] %s431_s16 }
  0x25   : > { %305 = vmatpush.msra.mxu0 %v284_v10  ;;  %529 = vmatpush.msra.mxu1 %v284_v10  ;;  %188 = vst [vmem:[#allocation2 + $0x80] sm:$0xff] %v661_v2 }
  0x26   : > { %533 = vmatpush.msra.mxu2 %v283_v11  ;;  %534 = vmatpush.msra.mxu3 %v283_v11  ;;  %189 = vst [vmem:[#allocation2 + $0x88] sm:$0xff] %v661_v2 }
  0x27   : > { %190 = vst [vmem:[#allocation2 + $0x90] sm:$0xff] %v661_v2  ;;  %306 = vmatpush.msra.mxu0 %v283_v11  ;;  %532 = vmatpush.msra.mxu1 %v283_v11 }
  0x28   : > { %536 = vmatpush.msra.mxu2 %v282_v12  ;;  %537 = vmatpush.msra.mxu3 %v282_v12  ;;  %191 = vst [vmem:[#allocation2 + $0x98] sm:$0xff] %v661_v2 }
  0x29   : > { %192 = vst [vmem:[#allocation2 + $0xa0] sm:$0xff] %v661_v2  ;;  %307 = vmatpush.msra.mxu0 %v282_v12  ;;  %535 = vmatpush.msra.mxu1 %v282_v12 }
  0x2a   : > { %539 = vmatpush.msra.mxu2 %v281_v13  ;;  %540 = vmatpush.msra.mxu3 %v281_v13  ;;  %193 = vst [vmem:[#allocation2 + $0xa8] sm:$0xff] %v661_v2 }
  0x2b   : > { %194 = vst [vmem:[#allocation2 + $0xb0] sm:$0xff] %v661_v2  ;;  %308 = vmatpush.msra.mxu0 %v281_v13  ;;  %538 = vmatpush.msra.mxu1 %v281_v13 }
  0x2c   : > { %542 = vmatpush.msra.mxu2 %v280_v14  ;;  %543 = vmatpush.msra.mxu3 %v280_v14  ;;  %195 = vst [vmem:[#allocation2 + $0xb8] sm:$0xff] %v661_v2 }
  0x2d   : > { %196 = vst [vmem:[#allocation2 + $0xc0] sm:$0xff] %v661_v2  ;;  %309 = vmatpush.msra.mxu0 %v280_v14  ;;  %541 = vmatpush.msra.mxu1 %v280_v14 }
  0x2e   : > { %545 = vmatpush.msra.mxu2 %v279_v15  ;;  %546 = vmatpush.msra.mxu3 %v279_v15  ;;  %197 = vst [vmem:[#allocation2 + $0xc8] sm:$0xff] %v661_v2 }
  0x2f   : > { %244 = vst.msk [vmem:[#allocation2 + $0x98] sm:$0xff] %vm224_vm0, %v217_v16  ;;  %310 = vmatpush.msra.mxu0 %v279_v15  ;;  %544 = vmatpush.msra.mxu1 %v279_v15 }
  0x30   : > { %548 = vmatpush.msra.mxu2 %v278_v17  ;;  %549 = vmatpush.msra.mxu3 %v278_v17  ;;  %238 = vst.msk [vmem:[#allocation2 + $0x68] sm:$0xff] %vm224_vm0, %v211_v18 }
  0x31   : > { %245 = vst.msk [vmem:[#allocation2 + $0xa0] sm:$0xff] %vm224_vm0, %v218_v19  ;;  %311 = vmatpush.msra.mxu0 %v278_v17  ;;  %547 = vmatpush.msra.mxu1 %v278_v17 }
  0x32   : > { %551 = vmatpush.msra.mxu2 %v277_v20  ;;  %552 = vmatpush.msra.mxu3 %v277_v20  ;;  %225 = vst.msk [vmem:[#allocation2] sm:$0xff] %vm224_vm0, %v198_v21 }
  0x33   : > { %349 = vmatmul.f32.vlgmr.msra.gmra.mxu2 %v263_v22  ;;  %312 = vmatpush.msra.mxu0 %v277_v20  ;;  %231 = vst.msk [vmem:[#allocation2 + $0x30] sm:$0xff] %vm224_vm0, %v204_v23 }
  0x34   : > { %550 = vmatpush.msra.mxu1 %v277_v20  ;;  %239 = vst.msk [vmem:[#allocation2 + $0x70] sm:$0xff] %vm224_vm0, %v212_v24 }
  0x35   : > { %246 = vst.msk [vmem:[#allocation2 + $0xa8] sm:$0xff] %vm224_vm0, %v219_v25 }
  0x36   : > { %v270_v29 = vld [vmem:[#allocation2 + $0x98] sm:$0xff]  ;;  %226 = vst.msk [vmem:[#allocation2 + $0x8] sm:$0xff] %vm224_vm0, %v199_v26 }
  0x37   : > { %370 = vmatmul.f32.vlgmr.msra.gmra.mxu3 %v270_v29  ;;  %232 = vst.msk [vmem:[#allocation2 + $0x38] sm:$0xff] %vm224_vm0, %v205_v27  ;;  %v264_v32 = vld [vmem:[#allocation2 + $0x68] sm:$0xff] }
  0x38   : > { %240 = vst.msk [vmem:[#allocation2 + $0x78] sm:$0xff] %vm224_vm0, %v213_v28  ;;  %v271_v39 = vld [vmem:[#allocation2 + $0xa0] sm:$0xff] }
  0x39   : > { %v251_v34 = vld [vmem:[#allocation2] sm:$0xff]  ;;  %247 = vst.msk [vmem:[#allocation2 + $0xb0] sm:$0xff] %vm224_vm0, %v220_v30 }
  0x3a   : > { %313 = vmatmul.f32.vlgmr.msra.gmra.mxu0 %v251_v34  ;;  %v257_v36 = vld [vmem:[#allocation2 + $0x30] sm:$0xff]  ;;  %227 = vst.msk [vmem:[#allocation2 + $0x10] sm:$0xff] %vm224_vm0, %v200_v31 }
  0x3b   : > { %352 = vmatmul.f32.gmra.mxu2 %v264_v32  ;;  %331 = vmatmul.f32.vlgmr.msra.gmra.mxu1 %v257_v36  ;;  %233 = vst.msk [vmem:[#allocation2 + $0x40] sm:$0xff] %vm224_vm0, %v206_v33  ;;  %v265_v45 = vld [vmem:[#allocation2 + $0x70] sm:$0xff] }
  0x3c   : > { %241 = vst.msk [vmem:[#allocation2 + $0x80] sm:$0xff] %vm224_vm0, %v214_v35  ;;  %v272_v50 = vld [vmem:[#allocation2 + $0xa8] sm:$0xff] }
  0x3d   : > { %248 = vst.msk [vmem:[#allocation2 + $0xb8] sm:$0xff] %vm224_vm0, %v221_v37  ;;  %v252_v43 = vld [vmem:[#allocation2 + $0x8] sm:$0xff] }
  0x3e   : > { %228 = vst.msk [vmem:[#allocation2 + $0x18] sm:$0xff] %vm224_vm0, %v201_v38  ;;  %v258_v46 = vld [vmem:[#allocation2 + $0x38] sm:$0xff] }
  0x3f   : > { %373 = vmatmul.f32.gmra.mxu3 %v271_v39  ;;  %234 = vst.msk [vmem:[#allocation2 + $0x48] sm:$0xff] %vm224_vm0, %v207_v40  ;;  %v266_v54 = vld [vmem:[#allocation2 + $0x78] sm:$0xff] }
  0x40   : > { %242 = vst.msk [vmem:[#allocation2 + $0x88] sm:$0xff] %vm224_vm0, %v215_v41  ;;  %v273_v56 = vld [vmem:[#allocation2 + $0xb0] sm:$0xff] }
  0x41   : > { %249 = vst.msk [vmem:[#allocation2 + $0xc0] sm:$0xff] %vm224_vm0, %v222_v42  ;;  %v253_v53 = vld [vmem:[#allocation2 + $0x10] sm:$0xff] }
  0x42   : > { %316 = vmatmul.f32.gmra.mxu0 %v252_v43  ;;  %229 = vst.msk [vmem:[#allocation2 + $0x20] sm:$0xff] %vm224_vm0, %v202_v44  ;;  %v259_v55 = vld [vmem:[#allocation2 + $0x40] sm:$0xff] }
  0x43   : > { %355 = vmatmul.f32.gmra.mxu2 %v265_v45  ;;  %334 = vmatmul.f32.gmra.mxu1 %v258_v46  ;;  %235 = vst.msk [vmem:[#allocation2 + $0x50] sm:$0xff] %vm224_vm0, %v208_v47  ;;  %v267_v58 = vld [vmem:[#allocation2 + $0x80] sm:$0xff] }
  0x44   : > { %243 = vst.msk [vmem:[#allocation2 + $0x90] sm:$0xff] %vm224_vm0, %v216_v48  ;;  %v274_v60 = vld [vmem:[#allocation2 + $0xb8] sm:$0xff] }
  0x45   : > { %250 = vst.msk [vmem:[#allocation2 + $0xc8] sm:$0xff] %vm224_vm0, %v223_v49  ;;  %v254_v57 = vld [vmem:[#allocation2 + $0x18] sm:$0xff] }
  0x46   : > { %230 = vst.msk [vmem:[#allocation2 + $0x28] sm:$0xff] %vm224_vm0, %v203_v51  ;;  %v260_v59 = vld [vmem:[#allocation2 + $0x48] sm:$0xff] }
  0x47   : > { %376 = vmatmul.f32.gmra.mxu3 %v272_v50  ;;  %236 = vst.msk [vmem:[#allocation2 + $0x58] sm:$0xff] %vm224_vm0, %v209_v52  ;;  %v268_v62 = vld [vmem:[#allocation2 + $0x88] sm:$0xff] }
  0x48   : > { %v275_v0 = vld [vmem:[#allocation2 + $0xc0] sm:$0xff] }
  0x49   : > { %v255_v61 = vld [vmem:[#allocation2 + $0x20] sm:$0xff] }
  0x4a   : > { %319 = vmatmul.f32.gmra.mxu0 %v253_v53  ;;  %v261_v63 = vld [vmem:[#allocation2 + $0x50] sm:$0xff] }
  0x4b   : > { %358 = vmatmul.f32.gmra.mxu2 %v266_v54  ;;  %337 = vmatmul.f32.gmra.mxu1 %v259_v55  ;;  %v269_v2 = vld [vmem:[#allocation2 + $0x90] sm:$0xff] }
  0x4c   : > { %v276_v4 = vld [vmem:[#allocation2 + $0xc8] sm:$0xff] }
  0x4d   : > { %v256_v1 = vld [vmem:[#allocation2 + $0x28] sm:$0xff] }
  0x4e   : > { %v262_v3 = vld [vmem:[#allocation2 + $0x58] sm:$0xff] }
  0x4f   : > { %379 = vmatmul.f32.gmra.mxu3 %v273_v56 }
  0x52   : > { %322 = vmatmul.f32.gmra.mxu0 %v254_v57 }
  0x53   : > { %361 = vmatmul.f32.gmra.mxu2 %v267_v58  ;;  %340 = vmatmul.f32.gmra.mxu1 %v260_v59 }
  0x57   : > { %382 = vmatmul.f32.gmra.mxu3 %v274_v60 }
  0x5a   : > { %325 = vmatmul.f32.gmra.mxu0 %v255_v61 }
  0x5b   : > { %364 = vmatmul.f32.gmra.mxu2 %v268_v62  ;;  %343 = vmatmul.f32.gmra.mxu1 %v261_v63 }
  0x5f   : > { %385 = vmatmul.f32.gmra.mxu3 %v275_v0 }
  0x62   : > { %328 = vmatmul.f32.gmra.mxu0 %v256_v1 }
  0x63   : > { %367 = vmatmul.f32.gmra.mxu2 %v269_v2  ;;  %346 = vmatmul.f32.gmra.mxu1 %v262_v3 }
  0x67   : > { %388 = vmatmul.f32.gmra.mxu3 %v276_v4 }
  0xb6   : > { %v350_v6 = vpop.f32.mrf.mxu2 }
  0xb7   : > { %v351_v7 = vadd.f32 %v870_v5, %v350_v6  ;;  %v314_v8 = vpop.f32.mrf.mxu0 }
  0xb8   : > { %v315_v9 = vadd.f32 %v870_v5, %v314_v8  ;;  %v332_v10 = vpop.f32.mrf.mxu1 }
  0xb9   : > { %404 = vst [vmem:[%s874_s29 + $0x60] sm:$0xff] %v351_v7  ;;  %v333_v11 = vadd.f32 %v870_v5, %v332_v10 }
  0xba   : > { %v371_v12 = vpop.f32.mrf.mxu3  ;;  %392 = vst [vmem:[%s874_s29] sm:$0xff] %v315_v9 }
  0xbb   : > { %v372_v13 = vadd.f32 %v870_v5, %v371_v12  ;;  %398 = vst [vmem:[%s874_s29 + $0x30] sm:$0xff] %v333_v11 }
  0xbd   : > { %411 = vst [vmem:[%s874_s29 + $0x98] sm:$0xff] %v372_v13 }
  0xbe   : > { %v353_v14 = vpop.f32.mrf.mxu2 }
  0xbf   : > { %v354_v15 = vadd.f32 %v870_v5, %v353_v14  ;;  %v317_v16 = vpop.f32.mrf.mxu0 }
  0xc0   : > { %v318_v17 = vadd.f32 %v870_v5, %v317_v16  ;;  %v335_v18 = vpop.f32.mrf.mxu1 }
  0xc1   : > { %405 = vst [vmem:[%s874_s29 + $0x68] sm:$0xff] %v354_v15  ;;  %v336_v19 = vadd.f32 %v870_v5, %v335_v18 }
  0xc2   : > { %v374_v20 = vpop.f32.mrf.mxu3  ;;  %393 = vst [vmem:[%s874_s29 + $0x8] sm:$0xff] %v318_v17 }
  0xc3   : > { %v375_v21 = vadd.f32 %v870_v5, %v374_v20  ;;  %399 = vst [vmem:[%s874_s29 + $0x38] sm:$0xff] %v336_v19 }
  0xc5   : > { %412 = vst [vmem:[%s874_s29 + $0xa0] sm:$0xff] %v375_v21 }
  0xc6   : > { %v356_v22 = vpop.f32.mrf.mxu2 }
  0xc7   : > { %v357_v23 = vadd.f32 %v870_v5, %v356_v22  ;;  %v320_v24 = vpop.f32.mrf.mxu0 }
  0xc8   : > { %v321_v25 = vadd.f32 %v870_v5, %v320_v24  ;;  %v338_v26 = vpop.f32.mrf.mxu1 }
  0xc9   : > { %406 = vst [vmem:[%s874_s29 + $0x70] sm:$0xff] %v357_v23  ;;  %v339_v27 = vadd.f32 %v870_v5, %v338_v26 }
  0xca   : > { %v377_v28 = vpop.f32.mrf.mxu3  ;;  %394 = vst [vmem:[%s874_s29 + $0x10] sm:$0xff] %v321_v25 }
  0xcb   : > { %v378_v29 = vadd.f32 %v870_v5, %v377_v28  ;;  %400 = vst [vmem:[%s874_s29 + $0x40] sm:$0xff] %v339_v27 }
  0xcd   : > { %413 = vst [vmem:[%s874_s29 + $0xa8] sm:$0xff] %v378_v29 }
  0xce   : > { %v359_v30 = vpop.f32.mrf.mxu2 }
  0xcf   : > { %v360_v31 = vadd.f32 %v870_v5, %v359_v30  ;;  %v323_v32 = vpop.f32.mrf.mxu0 }
  0xd0   : > { %v324_v33 = vadd.f32 %v870_v5, %v323_v32  ;;  %v341_v34 = vpop.f32.mrf.mxu1 }
  0xd1   : > { %407 = vst [vmem:[%s874_s29 + $0x78] sm:$0xff] %v360_v31  ;;  %v342_v35 = vadd.f32 %v870_v5, %v341_v34 }
  0xd2   : > { %v380_v36 = vpop.f32.mrf.mxu3  ;;  %395 = vst [vmem:[%s874_s29 + $0x18] sm:$0xff] %v324_v33 }
  0xd3   : > { %v381_v37 = vadd.f32 %v870_v5, %v380_v36  ;;  %401 = vst [vmem:[%s874_s29 + $0x48] sm:$0xff] %v342_v35 }
  0xd5   : > { %414 = vst [vmem:[%s874_s29 + $0xb0] sm:$0xff] %v381_v37 }
  0xd6   : > { %v362_v38 = vpop.f32.mrf.mxu2 }
  0xd7   : > { %v363_v39 = vadd.f32 %v870_v5, %v362_v38  ;;  %v326_v40 = vpop.f32.mrf.mxu0 }
  0xd8   : > { %v327_v41 = vadd.f32 %v870_v5, %v326_v40  ;;  %v344_v42 = vpop.f32.mrf.mxu1 }
  0xd9   : > { %408 = vst [vmem:[%s874_s29 + $0x80] sm:$0xff] %v363_v39  ;;  %v345_v43 = vadd.f32 %v870_v5, %v344_v42 }
  0xda   : > { %v383_v44 = vpop.f32.mrf.mxu3  ;;  %396 = vst [vmem:[%s874_s29 + $0x20] sm:$0xff] %v327_v41 }
  0xdb   : > { %v384_v45 = vadd.f32 %v870_v5, %v383_v44  ;;  %402 = vst [vmem:[%s874_s29 + $0x50] sm:$0xff] %v345_v43 }
  0xdd   : > { %415 = vst [vmem:[%s874_s29 + $0xb8] sm:$0xff] %v384_v45 }
  0xde   : > { %v365_v46 = vpop.f32.mrf.mxu2 }
  0xdf   : > { %v366_v47 = vadd.f32 %v870_v5, %v365_v46  ;;  %v329_v48 = vpop.f32.mrf.mxu0 }
  0xe0   : > { %v330_v49 = vadd.f32 %v870_v5, %v329_v48  ;;  %v347_v50 = vpop.f32.mrf.mxu1 }
  0xe1   : > { %409 = vst [vmem:[%s874_s29 + $0x88] sm:$0xff] %v366_v47  ;;  %v348_v51 = vadd.f32 %v870_v5, %v347_v50 }
  0xe2   : > { %v386_v52 = vpop.f32.mrf.mxu3  ;;  %397 = vst [vmem:[%s874_s29 + $0x28] sm:$0xff] %v330_v49 }
  0xe3   : > { %v387_v53 = vadd.f32 %v870_v5, %v386_v52  ;;  %403 = vst [vmem:[%s874_s29 + $0x58] sm:$0xff] %v348_v51 }
  0xe5   : > { %416 = vst [vmem:[%s874_s29 + $0xc0] sm:$0xff] %v387_v53 }
  0xe6   : > { %v368_v54 = vpop.f32.mrf.mxu2 }
  0xe7   : > { %v369_v55 = vadd.f32 %v870_v5, %v368_v54 }
  0xe9   : > { %410 = vst [vmem:[%s874_s29 + $0x90] sm:$0xff] %v369_v55 }
  0xea   : > { %v389_v56 = vpop.f32.mrf.mxu3 }
  0xeb   : > { %v390_v57 = vadd.f32 %v870_v5, %v389_v56 }
  0xed   : > { %417 = vst [vmem:[%s874_s29 + $0xc8] sm:$0xff] %v390_v57 }
  0xee   : > { %624 = shalt.err (!%p621_p3)
}
  0xef   : > { %s662_s11 = smov 128   ;;  %s663_s26 = smov 8  }
  0xf0   : > { %554 = dma.vmem_to_hbm [thread:$0]  (%p722_p5), %s432_s16, 3328, %s434_s7, %s419_s8, %s662_s11, %s662_s11, %s663_s26  }
  0xf1 PF: > { %p560_p4 = scmp.ge.s32.totalorder %s659_s15, 2  ;;  %s448_s27 = sand.u32 1, %s647_s12  }
  0xf2   : > { %s449_s28 = scalar_lea.sflag [#allocation4], %s448_s27 }
  0xf3   : > { %p557_p7 = pnand %p560_p4, %p726_p6 }
  0xf5   : > { %p558_p8 = pneg %p557_p7 }
  0xf7   : > { %642 = dma.done.wait (%p558_p8), %s449_s28, 3328  }
  0xf8   : > { %644 = vsyncadd (%p558_p8), %s449_s28, 4294963968  ;;  %p13_p9 = scmp.ge.s32.totalorder %s709_s18, 4   ;;  %s966_s12 = smov %s651_s13 }
  0xf9   : > { %s967_s13 = smov %s655_s14  ;;  %s968_s14 = smov %s720_s21 }
  0xfa   : > { %s969_s15 = smov %s709_s18  ;;  %15 = sbr.rel (!%p13_p9) target bundleno = 3 (0x3), region = 67 }
  0xff   :  { %455 = vsyncpa [#allocation4], 1 }
 0x100   :  { %457 = vsyncpa [#allocation4 + $0x1], 1 }

</bundles_post_ra>
